<compile_context>
chip_gen: v7x
topology: tpu7x:2x2x1
jax: 0.10.0
libtpu: 0.0.40
codegen_flags: <defaults>
</compile_context>

<pallas_src>
import functools

import jax
import jax.numpy as jnp
from jax.experimental import pallas as pl
from jax.experimental.pallas import tpu as pltpu

LANES = 128
ROW_PACK = 32               # block rows multiple of 32: valid packing for f32/bf16/int8
DEFAULT_TILE_ROWS = 2048    # (2048, 128) f32 block = 1 MiB; 2 inputs x 2 bufs ~ 4 MiB VMEM


def _focal_math(x, t, alpha, gamma):
    """Per-element focal loss in f32; t is binary {0, 1}."""
    pos = t > 0.5
    z = jnp.where(pos, x, -x)                   # +x for t=1, -x for t=0 (no 2t-1 mul)
    e = jnp.exp(-jnp.abs(z))                    # EUP exp
    sp = jnp.maximum(z, 0.0) + jnp.log1p(e)     # softplus(z) = -log(1 - pt)   (EUP log1p)
    bce = sp - z                                # softplus(-z) = -log(pt) = BCE
    at = jnp.where(pos, 1.0 - alpha, alpha)     # alpha "gather" on binary target
    mod = jnp.exp(jnp.float32(-gamma) * sp)     # (1 - pt)**gamma via one EUP exp, no pow
    return at * mod * bce


def _focal_loss_kernel(x_ref, t_ref, out_ref, *, alpha, gamma, tile_rows):
    # Blocks streamed from HBM; compute in f32 (inputs/targets may be bf16/int8).
    x = x_ref[...].astype(jnp.float32)
    t = t_ref[...].astype(jnp.float32)
    f_loss = _focal_math(x, t, alpha, gamma)
    # Per-tile partial sum kept lane/sublane shaped (8,128): pure vreg adds,
    # no cross-lane reduce and no 1-element masked store in the hot loop.
    # (Reshape is layout-preserving for f32; verify vld/vst counts in the dump.)
    psum = jnp.sum(f_loss.reshape(tile_rows // 8, 8, LANES), axis=0)
    out_ref[0] = psum


def _focal_sum_jax(x, t, alpha, gamma):
    """Plain-JAX sum for the (< one tile) tail / tiny-N fallback."""
    return jnp.sum(_focal_math(x.astype(jnp.float32), t.astype(jnp.float32),
                               alpha, gamma))


def focal_loss(inputs, targets, *, alpha=0.25, gamma=2, tile_rows=DEFAULT_TILE_ROWS):
    """Mean focal loss for 1-D logits/targets (targets binary {0, 1}).

    Targets may be f32, bf16 or int8 -- keep them narrow at the producer to
    shrink their HBM stream; the kernel upcasts to f32 internally.
    """
    assert inputs.ndim == 1 and inputs.shape == targets.shape
    n = inputs.shape[0]
    full_rows = n // LANES

    if full_rows < ROW_PACK:
        # Too small for even one packed tile: plain JAX is already optimal.
        return _focal_sum_jax(inputs, targets, alpha, gamma) / n

    tile_r = max(ROW_PACK, (min(tile_rows, full_rows) // ROW_PACK) * ROW_PACK)
    num_tiles = full_rows // tile_r
    main_rows = num_tiles * tile_r
    n_main = main_rows * LANES

    # Tile-aligned prefix only: slice + bitcast reshape, no jnp.pad copy of the
    # full arrays and no in-kernel tail mask.
    x_main = inputs[:n_main].reshape(main_rows, LANES)
    t_main = targets[:n_main].reshape(main_rows, LANES)

    kernel = functools.partial(_focal_loss_kernel, alpha=alpha, gamma=gamma,
                               tile_rows=tile_r)

    partials = pl.pallas_call(
        kernel,
        out_shape=jax.ShapeDtypeStruct((num_tiles, 8, LANES), jnp.float32),
        grid=(num_tiles,),
        in_specs=[
            # TODO(synk): benchmark pipeline_mode=pl.Buffered(3) here on large N.
            pl.BlockSpec((tile_r, LANES), lambda i: (i, 0)),
            pl.BlockSpec((tile_r, LANES), lambda i: (i, 0)),
        ],
        out_specs=pl.BlockSpec((1, 8, LANES), lambda i: (i, 0, 0)),
        compiler_params=pltpu.CompilerParams(
            dimension_semantics=("parallel",)),
    )(x_main, t_main)

    total = jnp.sum(partials)
    if n_main != n:
        # < one tile of leftovers: finish in plain JAX (no pad, no mask).
        total = total + _focal_sum_jax(inputs[n_main:], targets[n_main:], alpha, gamma)
    return total / n


def focal_loss_ref(inputs, targets, alpha=0.25, gamma=2):
    x = inputs.astype(jnp.float32)
    t = targets.astype(jnp.float32)
    bce = jnp.maximum(x, 0.0) - x * t + jnp.log1p(jnp.exp(-jnp.abs(x)))
    at = jnp.where(t > 0.5, 1.0 - alpha, alpha)
    pt = jnp.exp(-bce)
    return jnp.mean(at * (1.0 - pt) ** gamma * bce)


if __name__ == "__main__":
    key = jax.random.PRNGKey(0)
    k1, k2, k3, k4, k5, k6 = jax.random.split(key, 6)

    # 1) f32 logits/targets, tile-aligned N, single-tile grid.
    N1 = 8192                              # 64 rows of 128 lanes
    x1 = jax.random.normal(k1, (N1,), dtype=jnp.float32) * 2.0
    t1 = jax.random.bernoulli(k2, p=0.3, shape=(N1,)).astype(jnp.float32)
    got1 = focal_loss(x1, t1)
    jax.block_until_ready(got1)
    ref1 = focal_loss_ref(x1, t1)
    assert jnp.allclose(got1, ref1, rtol=5e-3, atol=1e-6), (got1, ref1)

    # 2) Same data, forced multi-tile pipeline (tile_rows=32 -> 2 grid steps).
    got2 = focal_loss(x1, t1, tile_rows=32)
    jax.block_until_ready(got2)
    assert jnp.allclose(got2, ref1, rtol=5e-3, atol=1e-6), (got2, ref1)

    # 3) bf16 logits + bf16 targets (narrow HBM streams), N not tile-aligned:
    #    kernel covers the aligned prefix, plain-JAX epilogue covers the tail.
    N3 = 5000
    x3 = (jax.random.normal(k3, (N3,), dtype=jnp.float32) * 2.0).astype(jnp.bfloat16)
    t3 = jax.random.bernoulli(k4, p=0.5, shape=(N3,)).astype(jnp.bfloat16)
    got3 = focal_loss(x3, t3)
    jax.block_until_ready(got3)
    ref3 = focal_loss_ref(x3.astype(jnp.float32), t3.astype(jnp.float32))
    assert jnp.allclose(got3, ref3, rtol=1e-2, atol=1e-5), (got3, ref3)

    # 4) Tiny N (< one packed tile): pure-JAX fallback path.
    N4 = 300
    x4 = jax.random.normal(k5, (N4,), dtype=jnp.float32)
    t4 = jax.random.bernoulli(k6, p=0.4, shape=(N4,)).astype(jnp.float32)
    got4 = focal_loss(x4, t4)
    jax.block_until_ready(got4)
    ref4 = focal_loss_ref(x4, t4)
    assert jnp.allclose(got4, ref4, rtol=5e-3, atol=1e-6), (got4, ref4)

    print("KERNEL_OK")
</pallas_src>

<mosaic_0001>
module attributes {stable_mosaic.version = 11 : i64} {
  func.func @_focal_loss_kernel(%arg0: i32, %arg1: memref<64x128xf32, #tpu.memory_space<vmem>>, %arg2: memref<64x128xf32, #tpu.memory_space<vmem>>, %arg3: memref<1x8x128xf32, #tpu.memory_space<vmem>>) attributes {dimension_semantics = [#tpu.dimension_semantics<parallel>], iteration_bounds = array<i64: 1>, scalar_prefetch = 0 : i64, scratch_operands = 0 : i64, tpu.core_type = #tpu.core_type<tc>, window_params = [{transform_indices = @transform_0, window_bounds = array<i64: 64, 128>}, {transform_indices = @transform_1, window_bounds = array<i64: 64, 128>}, {transform_indices = @transform_2, window_bounds = array<i64: 1, 8, 128>}]} {
    %c0 = arith.constant 0 : index
    %c0_0 = arith.constant 0 : index
    %0 = vector.load %arg1[%c0, %c0_0] : memref<64x128xf32, #tpu.memory_space<vmem>>, vector<64x128xf32>
    %c0_1 = arith.constant 0 : index
    %c0_2 = arith.constant 0 : index
    %1 = vector.load %arg2[%c0_1, %c0_2] : memref<64x128xf32, #tpu.memory_space<vmem>>, vector<64x128xf32>
    %cst = arith.constant 5.000000e-01 : f32
    %2 = vector.broadcast %cst : f32 to vector<64x128xf32>
    %3 = arith.cmpf ogt, %1, %2 : vector<64x128xf32>
    %cst_3 = arith.constant 0.000000e+00 : f32
    %4 = vector.broadcast %cst_3 : f32 to vector<64x128xf32>
    %5 = arith.subf %4, %0 : vector<64x128xf32>
    %6 = arith.select %3, %0, %5 : vector<64x128xi1>, vector<64x128xf32>
    %7 = math.absf %6 : vector<64x128xf32>
    %cst_4 = arith.constant 0.000000e+00 : f32
    %8 = vector.broadcast %cst_4 : f32 to vector<64x128xf32>
    %9 = arith.subf %8, %7 : vector<64x128xf32>
    %10 = math.exp %9 : vector<64x128xf32>
    %cst_5 = arith.constant 0.000000e+00 : f32
    %11 = vector.broadcast %cst_5 : f32 to vector<64x128xf32>
    %12 = arith.maximumf %6, %11 : vector<64x128xf32>
    %13 = math.log1p %10 : vector<64x128xf32>
    %14 = arith.addf %12, %13 : vector<64x128xf32>
    %15 = arith.subf %14, %6 : vector<64x128xf32>
    %cst_6 = arith.constant 7.500000e-01 : f32
    %cst_7 = arith.constant 2.500000e-01 : f32
    %16 = vector.broadcast %cst_6 : f32 to vector<64x128xf32>
    %17 = vector.broadcast %cst_7 : f32 to vector<64x128xf32>
    %18 = arith.select %3, %16, %17 : vector<64x128xi1>, vector<64x128xf32>
    %cst_8 = arith.constant -2.000000e+00 : f32
    %19 = vector.broadcast %cst_8 : f32 to vector<64x128xf32>
    %20 = arith.mulf %19, %14 : vector<64x128xf32>
    %21 = math.exp %20 : vector<64x128xf32>
    %22 = arith.mulf %18, %21 : vector<64x128xf32>
    %23 = arith.mulf %22, %15 : vector<64x128xf32>
    %24 = vector.shape_cast %23 : vector<64x128xf32> to vector<8x8x128xf32>
    %cst_9 = arith.constant dense<0.000000e+00> : vector<8x128xf32>
    %25 = vector.multi_reduction <add>, %24, %cst_9 [0] : vector<8x8x128xf32> to vector<8x128xf32>
    %c0_10 = arith.constant 0 : index
    %c0_11 = arith.constant 0 : index
    %c0_12 = arith.constant 0 : index
    %26 = vector.load %arg3[%c0_10, %c0_11, %c0_12] : memref<1x8x128xf32, #tpu.memory_space<vmem>>, vector<1x8x128xf32>
    %27 = vector.shape_cast %26 : vector<1x8x128xf32> to vector<8x128xf32>
    %28 = vector.shape_cast %25 : vector<8x128xf32> to vector<1x8x128xf32>
    tpu.vector_store %arg3[%c0_10, %c0_11, %c0_12], %28 {strides = array<i32>} : memref<1x8x128xf32, #tpu.memory_space<vmem>>, vector<1x8x128xf32>,
    return
  }
  func.func @transform_0(%arg0: i32) -> (i32, i32) {
    %c0_i32 = arith.constant 0 : i32
    %c0_i32_0 = arith.constant 0 : i32
    return %arg0, %c0_i32 : i32, i32
  }
  func.func @transform_1(%arg0: i32) -> (i32, i32) {
    %c0_i32 = arith.constant 0 : i32
    %c0_i32_0 = arith.constant 0 : i32
    return %arg0, %c0_i32 : i32, i32
  }
  func.func @transform_2(%arg0: i32) -> (i32, i32, i32) {
    %c0_i32 = arith.constant 0 : i32
    %c0_i32_0 = arith.constant 0 : i32
    %c0_i32_1 = arith.constant 0 : i32
    return %arg0, %c0_i32, %c0_i32_0 : i32, i32, i32
  }
}

</mosaic_0001>

<bundles_post_ra>
// kernel: tpu_custom_call.1
= control target key start
LH: loop header
LB: loop body
LE: loop exit
PB: predicated region body
PF: predicated region fallthrough
CT: control target
= control target key end

     0   :  { %7 = vsyncpa [#allocation3], 0  ;;  %s643_s0 = inlined_call_operand.hbm [shape: f32[64,128], index: 0, kind: input, shape index: {}]   ;;  %s644_s1 = inlined_call_operand.hbm [shape: f32[64,128], index: 1, kind: input, shape index: {}]   ;;  %s645_s2 = inlined_call_operand.hbm [shape: f32[1,8,128], index: 2, kind: output, shape index: {}]  }
   0x1   :  { %8 = vsyncpa [#allocation6], 0 }
   0x2   :  { %9 = vsyncpa [#allocation4], 0  ;;  %s406_s9 = smov [#allocation2]   ;;  %s334_s13 = scalar_lea.hbm %s643_s0, 1024 }
   0x3   :  { %s15_s10 = sshll.u32 %s406_s9, 4  ;;  %p335_p0 = scmp.ne.s32.totalorder %s643_s0, %s334_s13  ;;  %s16_s10 = int_to_ptr.vmem [resolvable:$true] %s15_s10 }
   0x4   :  { %p338_p1 = scmp.lt.u32.totalorder %s334_s13, %s643_s0 }
   0x6   :  { %p340_p2 = pnand %p338_p1, %p335_p0 }
   0x8   :  { %343 = shalt.err (!%p340_p2)
}
   0x9   :  { %s344_s18 = scalar_lea.vmem %s16_s10, 1024  ;;  %p349_p4 = scmp.lt.s32.totalorder %s16_s10, %s16_s10 }
   0xa   :  { %p345_p3 = scmp.ne.s32.totalorder %s16_s10, %s344_s18  ;;  %p350_p5 = scmp.lt.s32.totalorder %s344_s18, %s344_s18 }
   0xc   :  { %p351_p6 = por %p350_p5, %p349_p4 }
   0xe   :  { %p352_p7 = pnand %p351_p6, %p345_p3 }
  0x10   :  { %355 = shalt.err (!%p352_p7)
}
  0x11   :  { %s407_s19 = smov 128   ;;  %s408_s20 = smov 8  }
  0x12   :  { %21 = dma.hbm_to_vmem [thread:$0]  %s643_s0, 1024, %s16_s10, [#allocation3], %s407_s19, %s407_s19, %s408_s20  }
  0x13   :  { %s409_s23 = smov [#allocation5]   ;;  %s356_s27 = scalar_lea.hbm %s644_s1, 1024 }
  0x14   :  { %s27_s24 = sshll.u32 %s409_s23, 4  ;;  %p357_p8 = scmp.ne.s32.totalorder %s644_s1, %s356_s27  ;;  %s28_s24 = int_to_ptr.vmem [resolvable:$true] %s27_s24 }
  0x15   :  { %p360_p9 = scmp.lt.u32.totalorder %s356_s27, %s644_s1 }
  0x17   :  { %p362_p10 = pnand %p360_p9, %p357_p8 }
  0x19   :  { %365 = shalt.err (!%p362_p10)
}
  0x1a   :  { %s366_s4 = scalar_lea.vmem %s28_s24, 1024  ;;  %p371_p12 = scmp.lt.s32.totalorder %s28_s24, %s28_s24 }
  0x1b   :  { %p367_p11 = scmp.ne.s32.totalorder %s28_s24, %s366_s4  ;;  %p372_p13 = scmp.lt.s32.totalorder %s366_s4, %s366_s4 }
  0x1d   :  { %p373_p0 = por %p372_p13, %p371_p12 }
  0x1f   :  { %p374_p1 = pnand %p373_p0, %p367_p11 }
  0x21   :  { %377 = shalt.err (!%p374_p1)
}
  0x22   :  { %33 = dma.hbm_to_vmem [thread:$0]  %s644_s1, 1024, %s28_s24, [#allocation6], %s407_s19, %s407_s19, %s408_s20  }
  0x23   :  { %400 = dma.done.wait [#allocation3], 1024  }
  0x24   :  { %401 = vsyncadd [#allocation3], 4294966272 }
  0x25   :  { %402 = dma.done.wait [#allocation6], 1024  }
  0x26   :  { %403 = vsyncadd [#allocation6], 4294966272  ;;  %v40_v0 = vld [vmem:[#allocation2] sm:$0xff]  ;;  %v41_v1 = vld [vmem:[#allocation2 + $0x8] sm:$0xff]  ;;  %s411_s1 = smov [#allocation7]  }
  0x27   :  { %v42_v2 = vld [vmem:[#allocation2 + $0x10] sm:$0xff]  ;;  %v43_v3 = vld [vmem:[#allocation2 + $0x18] sm:$0xff]  ;;  %v44_v4 = vld [vmem:[#allocation2 + $0x20] sm:$0xff]  ;;  %v64_v6 = vsub.f32 0.0, %v40_v0  ;;  %v65_v7 = vsub.f32 0.0, %v41_v1  ;;  %s270_s6 = sshll.u32 %s411_s1, 4  ;;  %s271_s6 = int_to_ptr.vmem [resolvable:$true] %s270_s6 }
  0x28   :  { %v45_v5 = vld [vmem:[#allocation2 + $0x28] sm:$0xff]  ;;  %v66_v8 = vsub.f32 0.0, %v42_v2  ;;  %v46_v9 = vld [vmem:[#allocation2 + $0x30] sm:$0xff]  ;;  %v47_v10 = vld [vmem:[#allocation2 + $0x38] sm:$0xff]  ;;  %v67_v12 = vsub.f32 0.0, %v43_v3  ;;  %v68_v13 = vsub.f32 0.0, %v44_v4  ;;  %p383_p3 = scmp.lt.s32.totalorder %s271_s6, %s271_s6 }
  0x29   :  { %v451_v11 = vld [vmem:[#allocation5] sm:$0xff]  ;;  %v69_v14 = vsub.f32 0.0, %v45_v5  ;;  %v453_v15 = vld [vmem:[#allocation5 + $0x8] sm:$0xff]  ;;  %v455_v16 = vld [vmem:[#allocation5 + $0x10] sm:$0xff]  ;;  %v70_v18 = vsub.f32 0.0, %v46_v9  ;;  %v71_v19 = vsub.f32 0.0, %v47_v10 }
  0x2a   :  { %v457_v17 = vld [vmem:[#allocation5 + $0x18] sm:$0xff]  ;;  %vm56_vm0 = vcmp.gt.f32.partialorder %v451_v11, 0.5  ;;  %v460_v20 = vld [vmem:[#allocation5 + $0x20] sm:$0xff]  ;;  %v462_v21 = vld [vmem:[#allocation5 + $0x28] sm:$0xff]  ;;  %vm57_vm1 = vcmp.gt.f32.partialorder %v453_v15, 0.5  ;;  %vm58_vm2 = vcmp.gt.f32.partialorder %v455_v16, 0.5 }
  0x2b   :  { %v464_v22 = vld [vmem:[#allocation5 + $0x30] sm:$0xff]  ;;  %vm59_vm3 = vcmp.gt.f32.partialorder %v457_v17, 0.5  ;;  %v471_v23 = vsel %vm56_vm0, %v40_v0, %v64_v6  ;;  %v473_v24 = vld [vmem:[#allocation5 + $0x38] sm:$0xff]  ;;  %vm60_vm4 = vcmp.gt.f32.partialorder %v460_v20, 0.5  ;;  %vm61_vm5 = vcmp.gt.f32.partialorder %v462_v21, 0.5  ;;  %s378_s7 = scalar_lea.vmem %s271_s6, 128 }
  0x2c   :  { %vm62_vm6 = vcmp.gt.f32.partialorder %v464_v22, 0.5  ;;  %v480_v25 = vsel %vm57_vm1, %v41_v1, %v65_v7  ;;  %vm63_vm7 = vcmp.gt.f32.partialorder %v473_v24, 0.5  ;;  %v485_v26 = vsel %vm58_vm2, %v42_v2, %v66_v8  ;;  %p379_p2 = scmp.ne.s32.totalorder %s271_s6, %s378_s7  ;;  %p384_p4 = scmp.lt.s32.totalorder %s378_s7, %s378_s7 }
  0x2d   :  { %v489_v27 = vsel %vm59_vm3, %v43_v3, %v67_v12  ;;  %v493_v28 = vsel %vm60_vm4, %v44_v4, %v68_v13  ;;  %v497_v29 = vsel %vm61_vm5, %v45_v5, %v69_v14  ;;  %v501_v30 = vsel %vm62_vm6, %v46_v9, %v70_v18 }
  0x2e   :  { %v80_v31 = vand.u32 2147483647, %v471_v23  ;;  %v506_v32 = vsel %vm63_vm7, %v47_v10, %v71_v19  ;;  %v81_v33 = vand.u32 2147483647, %v480_v25  ;;  %v82_v34 = vand.u32 2147483647, %v485_v26  ;;  %p385_p5 = por %p384_p4, %p383_p3 }
  0x2f   :  { %v83_v35 = vand.u32 2147483647, %v489_v27  ;;  %v84_v36 = vand.u32 2147483647, %v493_v28  ;;  %v85_v37 = vand.u32 2147483647, %v497_v29 }
  0x30   :  { %v86_v38 = vand.u32 2147483647, %v501_v30  ;;  %v88_v39 = vsub.f32 0.0, %v80_v31  ;;  %v89_v40 = vsub.f32 0.0, %v81_v33  ;;  %v90_v41 = vsub.f32 0.0, %v82_v34  ;;  %p386_p6 = pnand %p385_p5, %p379_p2 }
  0x31   :  { %v87_v42 = vand.u32 2147483647, %v506_v32  ;;  %v91_v43 = vsub.f32 0.0, %v83_v35  ;;  %v92_v44 = vsub.f32 0.0, %v84_v36  ;;  %v93_v45 = vsub.f32 0.0, %v85_v37 }
  0x32   :  { %v96_v46 = vmul.f32 1.442695, %v88_v39  ;;  %v98_v47 = vmul.f32 1.442695, %v89_v40  ;;  %v94_v48 = vsub.f32 0.0, %v86_v38  ;;  %v112_v62 = vmax.f32 %v471_v23, 0.0 }
  0x33   :  { %v100_v49 = vmul.f32 1.442695, %v90_v41  ;;  %v102_v50 = vmul.f32 1.442695, %v91_v43  ;;  %v104_v51 = vmul.f32 1.442695, %v92_v44 }
  0x34   :  { %286 = vpow2.f32 %v96_v46  ;;  %v95_v52 = vsub.f32 0.0, %v87_v42  ;;  %v106_v53 = vmul.f32 1.442695, %v93_v45  ;;  %v108_v54 = vmul.f32 1.442695, %v94_v48 }
  0x35   :  { %288 = vpow2.f32 %v98_v47  ;;  %v113_v2 = vmax.f32 %v480_v25, 0.0  ;;  %v114_v3 = vmax.f32 %v485_v26, 0.0  ;;  %v115_v5 = vmax.f32 %v489_v27, 0.0 }
  0x36   :  { %290 = vpow2.f32 %v100_v49  ;;  %v110_v55 = vmul.f32 1.442695, %v95_v52  ;;  %v116_v9 = vmax.f32 %v493_v28, 0.0  ;;  %v117_v10 = vmax.f32 %v497_v29, 0.0 }
  0x37   :  { %292 = vpow2.f32 %v102_v50  ;;  %v118_v33 = vmax.f32 %v501_v30, 0.0  ;;  %v119_v34 = vmax.f32 %v506_v32, 0.0 }
  0x38   :  { %294 = vpow2.f32 %v104_v51 }
  0x39   :  { %296 = vpow2.f32 %v106_v53 }
  0x3a   :  { %298 = vpow2.f32 %v108_v54 }
  0x3b   :  { %300 = vpow2.f32 %v110_v55 }
  0x3e   :  { %v287_v56 = vpop.eup %286 }
  0x3f   :  { %v289_v57 = vpop.eup %288  ;;  %v120_v58 = vadd.f32 1.0, %v287_v56  ;;  %v123_v63 = vmul.f32 -0.5, %v287_v56  ;;  %v126_v4 = vand.u32 2147483647, %v287_v56 }
  0x40   :  { %v291_v59 = vpop.eup %290  ;;  %v129_v60 = vadd.f32 1.0, %v289_v57  ;;  %v132_v6 = vmul.f32 -0.5, %v289_v57  ;;  %v135_v12 = vand.u32 2147483647, %v289_v57 }
  0x41   :  { %v293_v61 = vpop.eup %292  ;;  %302 = vlog2.f32 %v120_v58  ;;  %v138_v0 = vadd.f32 1.0, %v291_v59  ;;  %v141_v13 = vmul.f32 -0.5, %v291_v59  ;;  %v124_v18 = vadd.f32 1.0, %v123_v63 }
  0x42   :  { %v295_v1 = vpop.eup %294  ;;  %304 = vlog2.f32 %v129_v60  ;;  %v147_v7 = vadd.f32 1.0, %v293_v61  ;;  %v150_v19 = vmul.f32 -0.5, %v293_v61  ;;  %vm525_vm8 = vcmp.lt.f32.partialorder %v126_v4, 0.0004427343 }
  0x43   :  { %306 = vlog2.f32 %v138_v0  ;;  %v297_v8 = vpop.eup %296  ;;  %v156_v31 = vadd.f32 1.0, %v295_v1  ;;  %v159_v36 = vmul.f32 -0.5, %v295_v1  ;;  %v133_v38 = vadd.f32 1.0, %v132_v6 }
  0x44   :  { %v521_v14 = vpop.eup %298  ;;  %308 = vlog2.f32 %v147_v7  ;;  %v144_v39 = vand.u32 2147483647, %v291_v59  ;;  %v165_v40 = vadd.f32 1.0, %v297_v8  ;;  %vm531_vm9 = vcmp.lt.f32.partialorder %v135_v12, 0.0004427343 }
  0x45   :  { %v529_v37 = vpop.eup %300  ;;  %310 = vlog2.f32 %v156_v31  ;;  %v142_v42 = vadd.f32 1.0, %v141_v13  ;;  %v153_v43 = vand.u32 2147483647, %v293_v61  ;;  %v174_v44 = vadd.f32 1.0, %v521_v14 }
  0x46   :  { %v125_v45 = vmul.f32 %v287_v56, %v124_v18  ;;  %v151_v46 = vadd.f32 1.0, %v150_v19  ;;  %312 = vlog2.f32 %v165_v40  ;;  %v168_v47 = vmul.f32 -0.5, %v297_v8 }
  0x47   :  { %v160_v48 = vadd.f32 1.0, %v159_v36  ;;  %v162_v49 = vand.u32 2147483647, %v295_v1  ;;  %314 = vlog2.f32 %v174_v44  ;;  %v183_v50 = vadd.f32 1.0, %v529_v37 }
  0x48   :  { %v134_v52 = vmul.f32 %v289_v57, %v133_v38  ;;  %vm537_vm10 = vcmp.lt.f32.partialorder %v144_v39, 0.0004427343  ;;  %v171_v54 = vand.u32 2147483647, %v297_v8  ;;  %v177_v55 = vmul.f32 -0.5, %v521_v14 }
  0x49   :  { %v143_v56 = vmul.f32 %v291_v59, %v142_v42  ;;  %vm542_vm11 = vcmp.lt.f32.partialorder %v153_v43, 0.0004427343  ;;  %316 = vlog2.f32 %v183_v50  ;;  %v152_v6 = vmul.f32 %v293_v61, %v151_v46 }
  0x4a   :  { %v169_v7 = vadd.f32 1.0, %v168_v47  ;;  %v186_v57 = vmul.f32 -0.5, %v529_v37  ;;  %v161_v18 = vmul.f32 %v295_v1, %v160_v48  ;;  %vm549_vm12 = vcmp.lt.f32.partialorder %v162_v49, 0.0004427343 }
  0x4b   :  { %v303_v51 = vpop.eup %302  ;;  %vm555_vm13 = vcmp.lt.f32.partialorder %v171_v54, 0.0004427343  ;;  %v178_v61 = vadd.f32 1.0, %v177_v55  ;;  %v180_v39 = vand.u32 2147483647, %v521_v14 }
  0x4c   :  { %v305_v58 = vpop.eup %304  ;;  %v122_v60 = vmul.f32 0.6931472, %v303_v51  ;;  %v170_v42 = vmul.f32 %v297_v8, %v169_v7  ;;  %v187_v43 = vadd.f32 1.0, %v186_v57  ;;  %v189_v47 = vand.u32 2147483647, %v529_v37 }
  0x4d   :  { %v307_v0 = vpop.eup %306  ;;  %v131_v4 = vmul.f32 0.6931472, %v305_v58  ;;  %vm181_vm14 = vcmp.lt.f32.partialorder %v180_v39, 0.0004427343 }
  0x4e   :  { %v128_v12 = vsel %vm525_vm8, %v125_v45, %v122_v60  ;;  %v140_v13 = vmul.f32 0.6931472, %v307_v0  ;;  %v309_v59 = vpop.eup %308  ;;  %v188_v58 = vmul.f32 %v529_v37, %v187_v43  ;;  %vm190_vm15 = vcmp.lt.f32.partialorder %v189_v47, 0.0004427343 }
  0x4f   :  { %v137_v31 = vsel %vm531_vm9, %v134_v52, %v131_v4  ;;  %v561_v38 = vadd.f32 %v128_v12, %v112_v62  ;;  %v149_v35 = vmul.f32 0.6931472, %v309_v59  ;;  %v311_v41 = vpop.eup %310 }
  0x50   :  { %v146_v1 = vsel %vm537_vm10, %v143_v56, %v140_v13  ;;  %v568_v40 = vadd.f32 %v137_v31, %v113_v2  ;;  %v158_v46 = vmul.f32 0.6931472, %v311_v41  ;;  %v313_v49 = vpop.eup %312  ;;  %v179_v2 = vmul.f32 %v521_v14, %v178_v61 }
  0x51   :  { %v572_v44 = vadd.f32 %v146_v1, %v114_v3  ;;  %v216_v62 = vmul.f32 -2.0, %v561_v38  ;;  %v155_v45 = vsel %vm542_vm11, %v152_v6, %v149_v35  ;;  %v315_v51 = vpop.eup %314  ;;  %v167_v53 = vmul.f32 0.6931472, %v313_v49 }
  0x52   :  { %v217_v48 = vmul.f32 -2.0, %v568_v40  ;;  %v582_v8 = vadd.f32 %v155_v45, %v115_v5  ;;  %v164_v52 = vsel %vm549_vm12, %v161_v18, %v158_v46  ;;  %v176_v55 = vmul.f32 0.6931472, %v315_v51 }
  0x53   :  { %v218_v3 = vmul.f32 -2.0, %v572_v44  ;;  %v224_v50 = vmul.f32 1.442695, %v216_v62  ;;  %v590_v14 = vadd.f32 %v164_v52, %v116_v9  ;;  %v317_v60 = vpop.eup %316  ;;  %v173_v56 = vsel %vm555_vm13, %v170_v42, %v167_v53 }
  0x54   :  { %v226_v54 = vmul.f32 1.442695, %v217_v48  ;;  %v219_v5 = vmul.f32 -2.0, %v582_v8  ;;  %v182_v0 = vsel %vm181_vm14, %v179_v2, %v176_v55  ;;  %v185_v4 = vmul.f32 0.6931472, %v317_v60 }
  0x55   :  { %318 = vpow2.f32 %v224_v50  ;;  %v228_v63 = vmul.f32 1.442695, %v218_v3  ;;  %v197_v6 = vadd.f32 %v173_v56, %v117_v10  ;;  %v198_v37 = vadd.f32 %v182_v0, %v118_v33 }
  0x56   :  { %v220_v9 = vmul.f32 -2.0, %v590_v14  ;;  %320 = vpow2.f32 %v226_v54  ;;  %v230_v7 = vmul.f32 1.442695, %v219_v5  ;;  %v191_v57 = vsel %vm190_vm15, %v188_v58, %v185_v4 }
  0x57   :  { %v221_v12 = vmul.f32 -2.0, %v197_v6  ;;  %322 = vpow2.f32 %v228_v63  ;;  %v199_v13 = vadd.f32 %v191_v57, %v119_v34  ;;  %v222_v18 = vmul.f32 -2.0, %v198_v37 }
  0x58   :  { %324 = vpow2.f32 %v230_v7  ;;  %v232_v19 = vmul.f32 1.442695, %v220_v9  ;;  %v410_v10 = vmov 0.25   ;;  %v200_v1 = vsub.f32 %v561_v38, %v471_v23 }
  0x59   :  { %v234_v59 = vmul.f32 1.442695, %v221_v12  ;;  %v223_v31 = vmul.f32 -2.0, %v199_v13  ;;  %v236_v36 = vmul.f32 1.442695, %v222_v18  ;;  %v208_v33 = vsel %vm56_vm0, 0.75, %v410_v10 }
  0x5a   :  { %326 = vpow2.f32 %v232_v19  ;;  %v209_v34 = vsel %vm57_vm1, 0.75, %v410_v10  ;;  %v201_v39 = vsub.f32 %v568_v40, %v480_v25  ;;  %v210_v41 = vsel %vm58_vm2, 0.75, %v410_v10 }
  0x5b   :  { %328 = vpow2.f32 %v234_v59  ;;  %v238_v61 = vmul.f32 1.442695, %v223_v31  ;;  %v202_v43 = vsub.f32 %v572_v44, %v485_v26  ;;  %v211_v23 = vsel %vm59_vm3, 0.75, %v410_v10 }
  0x5c   :  { %330 = vpow2.f32 %v236_v36  ;;  %v203_v15 = vsub.f32 %v582_v8, %v489_v27  ;;  %v212_v16 = vsel %vm60_vm4, 0.75, %v410_v10  ;;  %v204_v48 = vsub.f32 %v590_v14, %v493_v28 }
  0x5d   :  { %332 = vpow2.f32 %v238_v61  ;;  %v213_v17 = vsel %vm61_vm5, 0.75, %v410_v10  ;;  %v205_v49 = vsub.f32 %v197_v6, %v497_v29  ;;  %v214_v27 = vsel %vm62_vm6, 0.75, %v410_v10 }
  0x5e   :  { %v215_v20 = vsel %vm63_vm7, 0.75, %v410_v10  ;;  %v206_v28 = vsub.f32 %v198_v37, %v501_v30  ;;  %v207_v29 = vsub.f32 %v199_v13, %v506_v32 }
  0x5f   :  { %v319_v35 = vpop.eup %318 }
  0x60   :  { %v240_v42 = vmul.f32 %v319_v35, %v208_v33  ;;  %v321_v11 = vpop.eup %320 }
  0x61   :  { %v323_v38 = vpop.eup %322  ;;  %v241_v62 = vmul.f32 %v321_v11, %v209_v34 }
  0x62   :  { %v248_v45 = vmul.f32 %v240_v42, %v200_v1  ;;  %v325_v46 = vpop.eup %324  ;;  %v242_v47 = vmul.f32 %v323_v38, %v210_v41 }
  0x63   :  { %v243_v25 = vmul.f32 %v325_v46, %v211_v23  ;;  %v249_v40 = vmul.f32 %v241_v62, %v201_v39 }
  0x64   :  { %v250_v26 = vmul.f32 %v242_v47, %v202_v43  ;;  %v327_v44 = vpop.eup %326 }
  0x65   :  { %v251_v2 = vmul.f32 %v243_v25, %v203_v15  ;;  %v256_v8 = vadd.f32 %v249_v40, %v248_v45  ;;  %v329_v3 = vpop.eup %328  ;;  %v244_v50 = vmul.f32 %v327_v44, %v212_v16 }
  0x66   :  { %v331_v51 = vpop.eup %330  ;;  %v245_v52 = vmul.f32 %v329_v3, %v213_v17 }
  0x67   :  { %v257_v21 = vadd.f32 %v256_v8, %v250_v26  ;;  %v333_v53 = vpop.eup %332  ;;  %v246_v54 = vmul.f32 %v331_v51, %v214_v27  ;;  %v252_v55 = vmul.f32 %v244_v50, %v204_v48 }
  0x68   :  { %v247_v58 = vmul.f32 %v333_v53, %v215_v20  ;;  %v253_v22 = vmul.f32 %v245_v52, %v205_v49 }
  0x69   :  { %v258_v14 = vadd.f32 %v257_v21, %v251_v2  ;;  %v254_v5 = vmul.f32 %v246_v54, %v206_v28 }
  0x6a   :  { %v255_v56 = vmul.f32 %v247_v58, %v207_v29 }
  0x6b   :  { %v259_v60 = vadd.f32 %v258_v14, %v252_v55 }
  0x6d   :  { %v260_v63 = vadd.f32 %v259_v60, %v253_v22 }
  0x6f   :  { %v261_v24 = vadd.f32 %v260_v63, %v254_v5 }
  0x71   :  { %v262_v0 = vadd.f32 %v261_v24, %v255_v56 }
  0x73   :  { %263 = vst [vmem:[#allocation7] sm:$0xff] %v262_v0 }
  0x74   :  { %389 = shalt.err (!%p386_p6)
}
  0x75   :  { %s390_s10 = scalar_lea.hbm %s645_s2, 128 }
  0x76   :  { %p391_p7 = scmp.ne.s32.totalorder %s645_s2, %s390_s10  ;;  %p394_p8 = scmp.lt.u32.totalorder %s390_s10, %s645_s2 }
  0x78   :  { %p396_p9 = pnand %p394_p8, %p391_p7 }
  0x7a   :  { %399 = shalt.err (!%p396_p9)
}
  0x7b   :  { %273 = dma.vmem_to_hbm [thread:$0]  %s271_s6, 128, %s645_s2, [#allocation4]  }
  0x7c   :  { %404 = dma.done.wait [#allocation4], 128  }
  0x7d   :  { %405 = vsyncadd [#allocation4], 4294967168 }
  0x7e   :  { %277 = vsyncpa [#allocation3], 1 }
  0x7f   :  { %278 = vsyncpa [#allocation6], 1 }
  0x80   :  { %279 = vsyncpa [#allocation4], 1 }

</bundles_post_ra>
